<compile_context>
chip_gen: v6e
topology: v6e:2x2x1
jax: 0.10.0
libtpu: 0.0.40
codegen_flags: <defaults>
</compile_context>

<pallas_src>
import functools

import jax
import jax.numpy as jnp
from jax.experimental import pallas as pl
from jax.experimental.pallas import tpu as pltpu


def _se_kernel(x_ref, w1_ref, w2_ref, o_ref, acc_ref, *, inv_hw):
    """Grid = (N, num_hw_tiles); the HW tile axis is the (innermost) reduction.

    x_ref:   (C, T_HW)   current spatial tile of sample `n`
    w1_ref:  (C_mid, C)  fc1 1x1-conv weight (PyTorch layout, spatial squeezed)
    w2_ref:  (C, C_mid)  fc2 1x1-conv weight (PyTorch layout, spatial squeezed)
    o_ref:   (C, 1)      gate for sample `n`
    acc_ref: (C, T_HW)   f32 running elementwise sum (VPU-only inner loop)
    """
    t = pl.program_id(1)

    @pl.when(t == 0)
    def _init():
        acc_ref[...] = jnp.zeros_like(acc_ref)

    # Inner loop: pure VPU adds (no per-tile cross-lane reduce, no divide).
    acc_ref[...] += x_ref[...].astype(jnp.float32)

    @pl.when(t == pl.num_programs(1) - 1)
    def _epilogue():
        # One XLU reduce + one scale per sample, then the two tiny matmuls.
        pooled = jnp.sum(acc_ref[...], axis=-1, keepdims=True) * inv_hw   # (C, 1)
        h = jnp.dot(w1_ref[...], pooled, preferred_element_type=jnp.float32)
        h = jnp.maximum(h, 0.0)                                           # (C_mid, 1)
        g = jnp.dot(w2_ref[...], h, preferred_element_type=jnp.float32)   # (C, 1)
        o_ref[...] = jax.nn.sigmoid(g).astype(o_ref.dtype)


def se_forward(x_nchw, w1, w2, *, t_hw=None, tile_bytes=2 * 1024 * 1024):
    """x_nchw: (N, C, H, W) float (f32 or bf16).
    w1: (C_mid, C, 1, 1) fc1 conv weight (PyTorch layout).
    w2: (C, C_mid, 1, 1) fc2 conv weight (PyTorch layout).
    Returns the gate of shape (N, C, 1, 1), matching the PyTorch forward."""
    n, c, h, w = x_nchw.shape
    c_mid = w1.shape[0]
    hw = h * w
    itemsize = jnp.dtype(x_nchw.dtype).itemsize

    # Choose a lane-multiple spatial tile of a few MiB (fits double-buffering
    # in v7x's 64 MiB VMEM and v5e's 16 MiB scoped default).
    if t_hw is None:
        t_hw = max(128, (tile_bytes // (c * itemsize)) // 128 * 128)
    t_hw = max(128, min(t_hw, pl.cdiv(hw, 128) * 128) // 128 * 128)

    hw_pad = pl.cdiv(hw, t_hw) * t_hw
    num_t = hw_pad // t_hw

    x_flat = x_nchw.reshape(n, c, hw)
    if hw_pad != hw:
        # Zero padding does not perturb the sum; we divide by the true HW.
        x_flat = jnp.pad(x_flat, ((0, 0), (0, 0), (0, hw_pad - hw)))

    # 1x1-conv weights used directly in PyTorch (C_out, C_in) layout.
    w1_mat = w1.reshape(c_mid, c).astype(jnp.float32)
    w2_mat = w2.reshape(c, c_mid).astype(jnp.float32)

    kernel = functools.partial(_se_kernel, inv_hw=1.0 / float(hw))

    out = pl.pallas_call(
        kernel,
        out_shape=jax.ShapeDtypeStruct((n, c, 1), jnp.float32),
        grid=(n, num_t),
        in_specs=[
            pl.BlockSpec((None, c, t_hw), lambda i, t: (i, 0, t)),
            pl.BlockSpec((c_mid, c), lambda i, t: (0, 0)),
            pl.BlockSpec((c, c_mid), lambda i, t: (0, 0)),
        ],
        out_specs=pl.BlockSpec((None, c, 1), lambda i, t: (i, 0, 0)),
        scratch_shapes=[pltpu.VMEM((c, t_hw), jnp.float32)],
        compiler_params=pltpu.CompilerParams(
            dimension_semantics=("parallel", "arbitrary")),
        cost_estimate=pl.CostEstimate(
            flops=int(n * c * hw + 4 * n * c * c_mid),
            transcendentals=int(n * c),
            bytes_accessed=int(n * c * hw * itemsize
                               + 2 * c * c_mid * 4 + n * c * 4),
        ),
    )(x_flat, w1_mat, w2_mat)

    return out.reshape(n, c, 1, 1)


def se_reference(x_nchw, w1, w2):
    # Pure-JAX reference for sanity checking.
    pooled = jnp.mean(x_nchw.astype(jnp.float32), axis=(2, 3))          # (N, C)
    w1_mat = w1.reshape(w1.shape[0], -1).astype(jnp.float32)            # (C_mid, C)
    w2_mat = w2.reshape(w2.shape[0], -1).astype(jnp.float32)            # (C, C_mid)
    h = jnp.maximum(pooled @ w1_mat.T, 0.0)
    g = jax.nn.sigmoid(h @ w2_mat.T)
    return g.reshape(x_nchw.shape[0], x_nchw.shape[1], 1, 1)


if __name__ == "__main__":
    # Module config: in_channels=4, se_ratio=0.5 -> C_mid = max(1, int(4*0.5)) = 2
    N, C, H, W = 2, 4, 16, 16
    se_ratio = 0.5
    C_mid = max(1, int(C * se_ratio))

    key = jax.random.PRNGKey(0)
    kx, k1, k2 = jax.random.split(key, 3)
    x = jax.random.normal(kx, (N, C, H, W), dtype=jnp.float32)
    w1 = jax.random.normal(k1, (C_mid, C, 1, 1), dtype=jnp.float32) * 0.1  # fc1
    w2 = jax.random.normal(k2, (C, C_mid, 1, 1), dtype=jnp.float32) * 0.1  # fc2

    # t_hw=128 -> two pipelined HW-reduction steps for the small demo shape.
    out = se_forward(x, w1, w2, t_hw=128)
    jax.block_until_ready(out)
    ref = se_reference(x, w1, w2)
    assert out.shape == (N, C, 1, 1)
    assert jnp.allclose(out, ref, atol=1e-5, rtol=1e-5)

    # Ragged spatial extent (HW=169 not a multiple of the 128 tile) exercises
    # the zero-pad path while keeping the true-HW mean divisor.
    x2 = jax.random.normal(jax.random.PRNGKey(1), (N, C, 13, 13), dtype=jnp.float32)
    out2 = se_forward(x2, w1, w2, t_hw=128)
    jax.block_until_ready(out2)
    assert jnp.allclose(out2, se_reference(x2, w1, w2), atol=1e-5, rtol=1e-5)

    print("KERNEL_OK")
</pallas_src>

<mosaic_0001>
module attributes {stable_mosaic.version = 11 : i64} {
  func.func @_se_kernel(%arg0: i32, %arg1: i32, %arg2: memref<1x4x128xf32, #tpu.memory_space<vmem>>, %arg3: memref<2x4xf32, #tpu.memory_space<vmem>>, %arg4: memref<4x2xf32, #tpu.memory_space<vmem>>, %arg5: memref<1x4x1xf32, #tpu.memory_space<vmem>>, %arg6: memref<4x128xf32, #tpu.memory_space<vmem>>) attributes {dimension_semantics = [#tpu.dimension_semantics<parallel>, #tpu.dimension_semantics<arbitrary>], iteration_bounds = array<i64: 2, 2>, scalar_prefetch = 0 : i64, scratch_operands = 1 : i64, tpu.core_type = #tpu.core_type<tc>, window_params = [{transform_indices = @transform_0, window_bounds = array<i64: 1, 4, 128>}, {pipeline_mode = #tpu.pipeline_mode<synchronous>, transform_indices = @transform_1, window_bounds = array<i64: 2, 4>}, {pipeline_mode = #tpu.pipeline_mode<synchronous>, transform_indices = @transform_2, window_bounds = array<i64: 4, 2>}, {transform_indices = @transform_3, window_bounds = array<i64: 1, 4, 1>}]} {
    %c0_i32 = arith.constant 0 : i32
    %0 = arith.cmpi eq, %arg1, %c0_i32 : i32
    %1 = arith.extui %0 : i1 to i32
    %c0_i32_0 = arith.constant 0 : i32
    %2 = arith.cmpi ne, %1, %c0_i32_0 : i32
    scf.if %2 {
      %cst = arith.constant 0.000000e+00 : f32
      %11 = vector.broadcast %cst : f32 to vector<4x128xf32>
      %c0_8 = arith.constant 0 : index
      %c0_9 = arith.constant 0 : index
      %12 = vector.load %arg6[%c0_8, %c0_9] : memref<4x128xf32, #tpu.memory_space<vmem>>, vector<4x128xf32>
      tpu.vector_store %arg6[%c0_8, %c0_9], %11 {strides = array<i32>} : memref<4x128xf32, #tpu.memory_space<vmem>>, vector<4x128xf32>,
    } else {
    }
    %c0 = arith.constant 0 : index
    %c0_1 = arith.constant 0 : index
    %3 = vector.load %arg6[%c0, %c0_1] : memref<4x128xf32, #tpu.memory_space<vmem>>, vector<4x128xf32>
    %c0_2 = arith.constant 0 : index
    %c0_3 = arith.constant 0 : index
    %c0_4 = arith.constant 0 : index
    %4 = vector.load %arg2[%c0_2, %c0_3, %c0_4] : memref<1x4x128xf32, #tpu.memory_space<vmem>>, vector<1x4x128xf32>
    %5 = vector.shape_cast %4 : vector<1x4x128xf32> to vector<4x128xf32>
    %6 = arith.addf %3, %5 : vector<4x128xf32>
    %c0_5 = arith.constant 0 : index
    %c0_6 = arith.constant 0 : index
    %7 = vector.load %arg6[%c0_5, %c0_6] : memref<4x128xf32, #tpu.memory_space<vmem>>, vector<4x128xf32>
    tpu.vector_store %arg6[%c0_5, %c0_6], %6 {strides = array<i32>} : memref<4x128xf32, #tpu.memory_space<vmem>>, vector<4x128xf32>,
    %c1_i32 = arith.constant 1 : i32
    %8 = arith.cmpi eq, %arg1, %c1_i32 : i32
    %9 = arith.extui %8 : i1 to i32
    %c0_i32_7 = arith.constant 0 : i32
    %10 = arith.cmpi ne, %9, %c0_i32_7 : i32
    scf.if %10 {
      %c0_8 = arith.constant 0 : index
      %c0_9 = arith.constant 0 : index
      %11 = vector.load %arg6[%c0_8, %c0_9] : memref<4x128xf32, #tpu.memory_space<vmem>>, vector<4x128xf32>
      %cst = arith.constant dense<0.000000e+00> : vector<4xf32>
      %12 = vector.multi_reduction <add>, %11, %cst [1] : vector<4x128xf32> to vector<4xf32>
      %13 = vector.shape_cast %12 : vector<4xf32> to vector<4x1xf32>
      %cst_10 = arith.constant 3.906250e-03 : f32
      %14 = vector.broadcast %cst_10 : f32 to vector<4x1xf32>
      %15 = arith.mulf %13, %14 : vector<4x1xf32>
      %c0_11 = arith.constant 0 : index
      %c0_12 = arith.constant 0 : index
      %16 = vector.load %arg3[%c0_11, %c0_12] : memref<2x4xf32, #tpu.memory_space<vmem>>, vector<2x4xf32>
      %cst_13 = arith.constant dense<0.000000e+00> : vector<2x1xf32>
      %17 = tpu.matmul %16, %15, %cst_13 {dimension_numbers = #tpu.dot_dimension_numbers<[1], [0], [0], [1], [0, 0, 1, 1], [], []>} : vector<2x4xf32>, vector<4x1xf32>, vector<2x1xf32> -> vector<2x1xf32>
      %cst_14 = arith.constant 0.000000e+00 : f32
      %18 = vector.broadcast %cst_14 : f32 to vector<2x1xf32>
      %19 = arith.maximumf %17, %18 : vector<2x1xf32>
      %c0_15 = arith.constant 0 : index
      %c0_16 = arith.constant 0 : index
      %20 = vector.load %arg4[%c0_15, %c0_16] : memref<4x2xf32, #tpu.memory_space<vmem>>, vector<4x2xf32>
      %cst_17 = arith.constant dense<0.000000e+00> : vector<4x1xf32>
      %21 = tpu.matmul %20, %19, %cst_17 {dimension_numbers = #tpu.dot_dimension_numbers<[1], [0], [0], [1], [0, 0, 1, 1], [], []>} : vector<4x2xf32>, vector<2x1xf32>, vector<4x1xf32> -> vector<4x1xf32>
      %22 = arith.negf %21 : vector<4x1xf32>
      %23 = math.exp %22 : vector<4x1xf32>
      %cst_18 = arith.constant 1.000000e+00 : f32
      %24 = vector.broadcast %cst_18 : f32 to vector<4x1xf32>
      %25 = arith.addf %24, %23 : vector<4x1xf32>
      %26 = arith.divf %24, %25 : vector<4x1xf32>
      %c0_19 = arith.constant 0 : index
      %c0_20 = arith.constant 0 : index
      %c0_21 = arith.constant 0 : index
      %27 = vector.load %arg5[%c0_19, %c0_20, %c0_21] : memref<1x4x1xf32, #tpu.memory_space<vmem>>, vector<1x4x1xf32>
      %28 = vector.shape_cast %27 : vector<1x4x1xf32> to vector<4x1xf32>
      %29 = vector.shape_cast %26 : vector<4x1xf32> to vector<1x4x1xf32>
      tpu.vector_store %arg5[%c0_19, %c0_20, %c0_21], %29 {strides = array<i32>} : memref<1x4x1xf32, #tpu.memory_space<vmem>>, vector<1x4x1xf32>,
    } else {
    }
    return
  }
  func.func @transform_0(%arg0: i32, %arg1: i32) -> (i32, i32, i32) {
    %c0_i32 = arith.constant 0 : i32
    %c0_i32_0 = arith.constant 0 : i32
    return %arg0, %c0_i32, %arg1 : i32, i32, i32
  }
  func.func @transform_1(%arg0: i32, %arg1: i32) -> (i32, i32) {
    %c0_i32 = arith.constant 0 : i32
    %c0_i32_0 = arith.constant 0 : i32
    %c0_i32_1 = arith.constant 0 : i32
    return %c0_i32, %c0_i32_0 : i32, i32
  }
  func.func @transform_2(%arg0: i32, %arg1: i32) -> (i32, i32) {
    %c0_i32 = arith.constant 0 : i32
    %c0_i32_0 = arith.constant 0 : i32
    %c0_i32_1 = arith.constant 0 : i32
    return %c0_i32, %c0_i32_0 : i32, i32
  }
  func.func @transform_3(%arg0: i32, %arg1: i32) -> (i32, i32, i32) {
    %c0_i32 = arith.constant 0 : i32
    %c0_i32_0 = arith.constant 0 : i32
    %c0_i32_1 = arith.constant 0 : i32
    return %arg0, %c0_i32, %c0_i32_0 : i32, i32, i32
  }
}

</mosaic_0001>

<bundles_post_ra>
// kernel: tpu_custom_call.1
= control target key start
LH: loop header
LB: loop body
LE: loop exit
PB: predicated region body
PF: predicated region fallthrough
CT: control target
= control target key end

     0   :  { %8 = vsyncpa [#allocation4], 0  ;;  %s832_s0 = inlined_call_operand.hbm [shape: f32[2,4,256], index: 0, kind: input, shape index: {}]   ;;  %s833_s1 = inlined_call_operand.vmem [shape: f32[2,4], index: 1, kind: input, shape index: {}]   ;;  %s834_s2 = inlined_call_operand.vmem [shape: f32[4,2], index: 2, kind: input, shape index: {}]   ;;  %s835_s3 = inlined_call_operand.vmem [shape: f32[2,4,1], index: 3, kind: output, shape index: {}]  }
   0x1   :  { %10 = vsyncpa [#allocation4 + $0x1], 0  ;;  %s696_s12 = smov 0   ;;  %s698_s13 = smov 0  }
   0x2   :  { %s700_s14 = smov 0   ;;  %s702_s15 = smov 0  }
   0x3   :  { %s704_s16 = smov 0   ;;  %s706_s17 = smov 0  }
   0x4   :  { %s708_s18 = smov 0   ;;  %s710_s19 = smov 0  }
   0x5 LB: > { %s465_s20 = sadd.s32 4294967295, %s670_s19   ;;  %s25_s21 = sadd.s32 1, %s662_s17  ;;  %s670_s19 = sphi %s710_s19, %s16_s19   ;;  %s666_s18 = sphi %s708_s18, %s845_s18   ;;  %s662_s17 = sphi %s706_s17, %s844_s17   ;;  %s658_s16 = sphi %s704_s16, %s843_s16   ;;  %s654_s15 = sphi %s702_s15, %s842_s15   ;;  %s650_s14 = sphi %s700_s14, %s841_s14   ;;  %s646_s13 = sphi %s698_s13, %s840_s13   ;;  %s642_s12 = sphi %s696_s12, %s839_s12  }
   0x6   : > { %p26_p0 = scmp.ge.s32.totalorder %s25_s21, 2  ;;  %s28_s22 = sadd.s32 1, %s666_s18 }
   0x7   : > { %s37_s23 = sadd.s32 1, %s650_s14  ;;  %p44_p1 = scmp.ne.s32.totalorder %s650_s14, %s646_s13 }
   0x8   : > { %s847_s21 = smov (%p26_p0, %s25_s21), 0  ;;  %s849_s22 = smov (!%p26_p0, %s28_s22), %s666_s18 }
   0x9   : > { %s33_s24 = ssub.s32 %s662_s17, %s847_s21  ;;  %p45_p2 = scmp.eq.s32.totalorder %s670_s19, 0 }
   0xa   : > { %p30_p3 = scmp.ge.s32.totalorder %s849_s22, 2  ;;  %p50_p4 = scmp.ne.s32.totalorder %s646_s13, %s642_s12 }
   0xb   : > { %p747_p5 = por %p45_p2, %p44_p1  ;;  %p51_p6 = scmp.eq.s32.totalorder %s465_s20, 0 }
   0xc   : > { %s851_s22 = smov (%p30_p3, %s849_s22), 0  ;;  %p504_p8 = scmp.lt.s32.totalorder %s670_s19, 4 }
   0xd   : > { %p753_p7 = por %p51_p6, %p50_p4  ;;  %s32_s27 = ssub.s32 %s666_s18, %s851_s22 }
   0xe   : > { %s34_s28 = sor.u32 %s33_s24, %s32_s27  ;;  %s148_s29 = sand.u32 1, %s650_s14  }
   0xf   : > { %p35_p9 = scmp.eq.s32.totalorder %s34_s28, 0  ;;  %s469_s30 = sshll.u32 %s148_s29, 2 }
  0x10   : > { %s470_s4 = sshll.u32 %s666_s18, 1  ;;  %s152_s8 = scalar_lea.vmem [#allocation3], %s469_s30 }
  0x11   : > { %s763_s5 = scalar_select %p35_p9, %s650_s14, %s37_s23  }
  0x12   : > { %s157_s6 = sadd.s32 %s662_s17, %s470_s4  ;;  %s161_s9 = sshll.u32 %s152_s8, 4  ;;  %s162_s9 = int_to_ptr.vmem [resolvable:$true] %s161_s9 }
  0x13   : > { %s471_s7 = sshll.u32 %s157_s6, 6  ;;  %p773_p10 = pnand %p504_p8, %p747_p5 }
  0x14   : > { %s159_s12 = scalar_lea.hbm %s832_s0, %s471_s7  ;;  %p472_p11 = scmp.ge.s32.totalorder %s670_s19, 1 }
  0x15   : > { %p166_p12 = scmp.lt.s32.totalorder %s670_s19, 5  ;;  %s149_s23 = scalar_lea.sflag [#allocation4], %s148_s29 }
  0x16   : > { %p578_p13 = pneg %p773_p10  ;;  %s589_s24 = scalar_lea.vmem %s162_s9, 64 }
  0x17   : > { %p590_p0 = scmp.ne.s32.totalorder %s162_s9, %s589_s24  ;;  %s672_s27 = smov [#allocation3]  }
  0x18   : > { %s594_s28 = sshll.u32 %s672_s27, 4  ;;  %s595_s28 = int_to_ptr.vmem [resolvable:$false] %s594_s28 }
  0x19   : > { %p592_p1 = pnand %p590_p0, %p578_p13  ;;  %s596_s30 = scalar_lea.vmem %s595_s28, 128 }
  0x1a   : > { %p597_p3 = scmp.lt.s32.totalorder %s162_s9, %s595_s28  ;;  %p598_p4 = scmp.lt.s32.totalorder %s596_s30, %s589_s24 }
  0x1b   : > { %p593_p2 = pneg %p592_p1 }
  0x1c   : > { %p599_p5 = por %p598_p4, %p597_p3 }
  0x1e   : > { %p600_p6 = pnand %p599_p5, %p593_p2 }
  0x20   : > { %603 = shalt.err (!%p600_p6)
}
  0x21   : > { %503 = dma.hbm_to_vmem [thread:$0]  (!%p773_p10), %s159_s12, 64, %s162_s9, %s149_s23  }
  0x22   : > { %p167_p8 = pnand %p472_p11, %p166_p12 }
  0x23   : > { %s172_s25 = sand.u32 (!%p167_p8), 1, %s646_s13  }
  0x24   : > { %170 = sbr.rel (%p167_p8) target bundleno = 632 (0x278), region = 32  ;;  %s473_s29 = sshll.u32 (!%p167_p8), %s172_s25, 2 }
  0x25   : > { %s173_s4 = scalar_lea.sflag (!%p167_p8), [#allocation4], %s172_s25  ;;  %s176_s6 = scalar_lea.vmem (!%p167_p8), [#allocation3], %s473_s29 }
  0x29   : > { %637 = dma.done.wait (%p753_p7), %s173_s4, 64  }
  0x2a   : > { %639 = vsyncadd (%p753_p7), %s173_s4, 4294967232  ;;  %p198_p9 = scmp.lt.s32.totalorder %s658_s16, 1  ;;  %p475_p10 = scmp.ne.s32.totalorder %s654_s15, 0 }
  0x2c   : > { %s853_s16 = smov (!%p198_p9, %s658_s16), 1  ;;  %205 = sbr.rel (%p475_p10) target bundleno = 51 (0x33), region = 40 }
  0x2d   : > { %s474_s7 = sshll.u32 %s853_s16, 2 }
  0x2e   : > { %s797_s10 = scalar_lea.vmem %s835_s3, %s474_s7 }
  0x31   : > { %v673_v0 = vmov 0.0  }
  0x32   : > { %206 = vst [vmem:[#allocation2] sm:$0xf] %v673_v0 }
  0x33 PF: > { %v208_v2 = vld [vmem:[%s176_s6] sm:$0xf]  ;;  %p476_p7 = scmp.ne.s32.totalorder %s654_s15, 1 }
  0x38   : > { %214 = sbr.rel (%p476_p7) target bundleno = 632 (0x278), region = 44 }
  0x39   : > { %v207_v1 = vld [vmem:[#allocation2] sm:$0xf] }
  0x3a   : > { %v209_v3 = vadd.f32 %v208_v2, %v207_v1 }
  0x3c   : > { %210 = vst [vmem:[#allocation2] sm:$0xf] %v209_v3 }
  0x3d   : > { %vm216_vm0 = vcmask 1043456   ;;  %v674_v6 = vmov 0.0   ;;  %vm675_vm1 = vmmov 0   ;;  %v221_v9 = vld [vmem:[%s833_s1] sm:$0x3]  ;;  %vm222_vm2 = vcmask 31744  }
  0x3e   : > { %488 = vmatprep.subr.mxu0 %v674_v6  ;;  %493 = vmatprep.subr.mxu1 %v674_v6  ;;  %vm305_vm3 = vcmask 1041408   ;;  %v300_v12 = vld [vmem:[%s834_s2] sm:$0xf]  ;;  %vm301_vm4 = vcmask 15360   ;;  %vm385_vm5 = vcmask 3072  }
  0x3f   : > { %490 = vmatprep.mubr.msk.f32.mxu0 %vm675_vm1, %v674_v6  ;;  %495 = vmatprep.mubr.msk.f32.mxu1 %vm675_vm1, %v674_v6 }
  0x43   : > { %v215_v4 = vld [vmem:[#allocation2] sm:$0xf] }
  0x44   : > { %v217_v5 = vsel %vm216_vm0, %v215_v4, 0.0 }
  0x45   : > { %218 = vadd.xlane.f32.xlu0 %v217_v5 }
  0xce   : > { %v219_v7 = vpop.xlane.xlu0 %218 }
  0xcf   : > { %v220_v8 = vmul.f32 0.00390625, %v219_v7 }
  0xd1   : > { %489 = vmatpush3.msk.msra.mxu0 %vm216_vm0, %v220_v8 }
  0xd2   : > { %491 = vmatmul.mubr.msk.f32.vlgmr.msra.gmra.mxu0 %vm222_vm2, %v221_v9 }
 0x192   : > { %v295_v10 = vpop.f32.mrf.mxu0 }
 0x193   : > { %v299_v11 = vmax.f32 %v295_v10, 0.0 }
 0x194   : > { %v492_v13 = vpop.f32.mrf.mxu0 }
 0x195   : > { %494 = vmatpush3.msk.msra.mxu1 %vm305_vm3, %v299_v11 }
 0x196   : > { %496 = vmatmul.mubr.msk.f32.vlgmr.msra.gmra.mxu1 %vm301_vm4, %v300_v12 }
 0x256   : > { %v375_v14 = vpop.f32.mrf.mxu1 }
 0x257   : > { %v481_v15 = vmul.f32 -1.442695, %v375_v14 }
 0x258   : > { %v497_v16 = vpop.f32.mrf.mxu1 }
 0x259   : > { %572 = vpow2.f32 %v481_v15 }
 0x266   : > { %v573_v17 = vpop.eup %572 }
 0x267   : > { %v382_v18 = vadd.f32 1.0, %v573_v17 }
 0x269   : > { %574 = vrcp.f32 %v382_v18 }
 0x276   : > { %v575_v19 = vpop.eup %574 }
 0x277   : > { %386 = vst.msk [vmem:[%s797_s10] sm:$0xf] %vm385_vm5, %v575_v19 }
 0x278 PF: > { %s16_s19 = sadd.s32 1, %s670_s19   ;;  %s839_s12 = smov %s646_s13 }
 0x279   : > { %p13_p11 = scmp.ge.s32.totalorder %s16_s19, 6   ;;  %s840_s13 = smov %s650_s14 }
 0x27a   : > { %s841_s14 = smov %s763_s5  ;;  %s842_s15 = smov %s662_s17 }
 0x27b   : > { %s843_s16 = smov %s666_s18  ;;  %s844_s17 = smov %s847_s21 }
 0x27c   : > { %s845_s18 = smov %s851_s22  ;;  %15 = sbr.rel (!%p13_p11) target bundleno = 5 (0x5), region = 80 }
 0x281   :  { %406 = vsyncpa [#allocation4], 1 }
 0x282   :  { %408 = vsyncpa [#allocation4 + $0x1], 1 }

</bundles_post_ra>
